<compile_context>
chip_gen: v6e
topology: v6e:2x2x1
jax: 0.10.0
libtpu: 0.0.40
codegen_flags: <defaults>
</compile_context>

<pallas_src>
import jax
import jax.numpy as jnp
from jax.experimental import pallas as pl
from jax.experimental.pallas import tpu as pltpu


def _scale_conv1x1_kernel(x_ref, s_ref, w_ref, o_ref):
    # x_ref : (Bt, Cin, T)   activation tile, spatial lane-dense
    # s_ref : (Bt, 1,  Cin)  per-(batch, channel) SE scale (f32)
    # w_ref : (Cout, Cin)    1x1 conv weight (f32), VMEM-resident across grid
    # o_ref : (Bt, Cout, T)  lane-dense output tile
    #
    # Fold the channel scale into the small weight (exact, in f32):
    #   W @ (s * x) == (W * s) @ x   -> Bt*Cout*Cin mults instead of Bt*Cin*T,
    # then cast once to the activation dtype so the MXU sees matched operands.
    w_scaled = (w_ref[...][None, :, :] * s_ref[...]).astype(x_ref.dtype)
    o_ref[...] = jnp.einsum(
        "bok,bkt->bot", w_scaled, x_ref[...],
        preferred_element_type=jnp.float32,
    ).astype(o_ref.dtype)


_STEP_OVERHEAD_S = 0.35e-6            # fixed per-grid-step overhead
_ASSUMED_HBM_BW = 1.0e12              # conservative cross-generation HBM BW
_VMEM_STEP_BUDGET = 12 * 1024 * 1024  # double-buffered bytes/step, < v5e 16 MiB default


def _choose_hw_tile(hw, *, cap, overhead_lanes, min_tiles=1):
    """Pick a lane-dense spatial tile (multiple of 128, never exceeding HW).

    Cost model: each grid step pays its (possibly padded) tile payload plus a
    fixed ~0.35us overhead expressed as `overhead_lanes` equivalent lane
    columns of HBM time.  Minimising  n_tiles * (T + overhead)  trades the
    ragged-tail waste against per-step overhead.
    """
    if hw <= 128:
        return hw, 1                          # full-extent block is always legal
    hi = max(128, min((cap // 128) * 128, (hw // 128) * 128))
    best = None
    for t in range(128, hi + 1, 128):
        n = max(min_tiles, -(-hw // t))
        key = (n * (t + overhead_lanes), n)
        if best is None or key < best[0]:
            best = (key, t, n)
    _, t, n = best
    return t, n


def _largest_divisor_leq(n, cap):
    for d in range(max(1, min(n, cap)), 0, -1):
        if n % d == 0:
            return d
    return 1


def scale_then_conv1x1(x_nchw, scale_nc11, weight_oihw, *,
                       activation_dtype=jnp.bfloat16,
                       out_dtype=None,
                       hw_tile_cap=2048,
                       batch_tile_cap=8):
    """y = Conv2d_1x1(weight)(x * scale), computed directly in NCHW layout.

    x_nchw:      (N, Cin, H, W)
    scale_nc11:  (N, Cin, 1, 1)
    weight_oihw: (Cout, Cin, 1, 1)
    activation_dtype: storage/compute dtype of the dominant activation stream.
        Defaults to bf16 (halves the main HBM stream on every TPU generation);
        scale/weight stay f32, the folded (w*s) is cast once, MXU accumulation
        is f32.  Pass jnp.float32 (or None) for an exact path.
        NOTE: in a full network the upstream op would already emit bf16, so
        the cast fuses away; standalone it is one extra pass over x.
    """
    N, Cin, H, W = x_nchw.shape
    Cout = weight_oihw.shape[0]
    HW = H * W
    out_dtype = x_nchw.dtype if out_dtype is None else out_dtype

    # Zero-copy reshapes only — no transposes on the HBM-sized tensor.
    x = x_nchw.reshape(N, Cin, HW)
    s = scale_nc11.reshape(N, 1, Cin).astype(jnp.float32)
    w = weight_oihw.reshape(Cout, Cin).astype(jnp.float32)
    if activation_dtype is not None:
        x = x.astype(activation_dtype)

    bytes_x = jnp.dtype(x.dtype).itemsize
    bytes_o = jnp.dtype(out_dtype).itemsize
    bytes_per_lane = Cin * bytes_x + Cout * bytes_o

    # ---- spatial tile via the payload-vs-overhead cost model ---------------
    overhead_lanes = int(_STEP_OVERHEAD_S * _ASSUMED_HBM_BW / bytes_per_lane)
    overhead_lanes = max(128, (overhead_lanes // 128) * 128)
    T, n_hw = _choose_hw_tile(HW, cap=hw_tile_cap, overhead_lanes=overhead_lanes)

    # ---- batch tile: raise per-step payload for small spatial sizes --------
    def step_bytes(bt):
        return 2 * bt * T * bytes_per_lane          # double-buffered in + out
    bt = 1
    for d in range(max(1, min(N, batch_tile_cap)), 0, -1):
        if N % d == 0 and step_bytes(d) <= _VMEM_STEP_BUDGET:
            bt = d
            break

    # ---- keep both v7x TensorCores fed: >= 2 parallel steps when possible --
    if (N // bt) * n_hw < 2:
        if HW > 128:
            T, n_hw = _choose_hw_tile(HW, cap=hw_tile_cap,
                                      overhead_lanes=overhead_lanes, min_tiles=2)
        elif N > 1:
            bt = _largest_divisor_leq(N, N // 2)

    grid = (N // bt, n_hw)

    out = pl.pallas_call(
        _scale_conv1x1_kernel,
        out_shape=jax.ShapeDtypeStruct((N, Cout, HW), out_dtype),
        grid_spec=pltpu.PrefetchScalarGridSpec(
            num_scalar_prefetch=0,
            grid=grid,
            in_specs=[
                pl.BlockSpec((bt, Cin, T), lambda b, t: (b, 0, t)),
                pl.BlockSpec((bt, 1, Cin), lambda b, t: (b, 0, 0)),
                pl.BlockSpec((Cout, Cin), lambda b, t: (0, 0)),  # VMEM-resident
            ],
            out_specs=pl.BlockSpec((bt, Cout, T), lambda b, t: (b, 0, t)),
        ),
        compiler_params=pltpu.CompilerParams(
            dimension_semantics=("parallel", "parallel"),
        ),
    )(x, s, w)

    return out.reshape(N, Cout, H, W)


def _reference(x_nchw, scale_nc11, weight_oihw):
    Cout, Cin = weight_oihw.shape[0], weight_oihw.shape[1]
    return jnp.einsum(
        "oc,nchw->nohw", weight_oihw.reshape(Cout, Cin), x_nchw * scale_nc11
    )


if __name__ == "__main__":
    Cin, Cout = 240, 40      # fixed by the module's Conv2d(240, 40, 1, bias=False)
    key = jax.random.PRNGKey(0)
    kx, ks, kw = jax.random.split(key, 3)
    weight = (jax.random.normal(kw, (Cout, Cin, 1, 1), dtype=jnp.float32)
              * (1.0 / jnp.sqrt(Cin)))

    # --- case 1: small spatial (16x16), f32 activations (exact path) --------
    x1 = jax.random.normal(kx, (1, Cin, 16, 16), dtype=jnp.float32)
    s1 = jax.random.normal(ks, (1, Cin, 1, 1), dtype=jnp.float32)
    y1 = scale_then_conv1x1(x1, s1, weight, activation_dtype=jnp.float32)
    jax.block_until_ready(y1)
    r1 = _reference(x1, s1, weight)
    assert y1.shape == (1, Cout, 16, 16)
    assert jnp.allclose(y1, r1, atol=1e-4, rtol=1e-4)

    # --- case 2: production-like 14x14, batch=2, default bf16 path ----------
    #     (exercises batch tile, ragged spatial tail, >=2-step parallel grid)
    x2 = jax.random.normal(kx, (2, Cin, 14, 14), dtype=jnp.float32)
    s2 = jax.random.normal(ks, (2, Cin, 1, 1), dtype=jnp.float32)
    y2 = scale_then_conv1x1(x2, s2, weight)   # bf16 activations, f32 accum/out
    jax.block_until_ready(y2)
    r2 = _reference(x2, s2, weight)
    assert jnp.allclose(y2, r2, atol=1e-1, rtol=1e-1)

    # --- case 3: the module's actual shape (1, 240, 56, 56) ------------------
    x3 = jax.random.normal(kx, (1, Cin, 56, 56), dtype=jnp.float32)
    s3 = jax.random.normal(ks, (1, Cin, 1, 1), dtype=jnp.float32)
    r3 = _reference(x3, s3, weight)

    y3 = scale_then_conv1x1(x3, s3, weight, activation_dtype=jnp.float32)  # exact
    jax.block_until_ready(y3)
    assert jnp.allclose(y3, r3, atol=1e-4, rtol=1e-4)

    y4 = scale_then_conv1x1(x3, s3, weight)   # perf-default bf16 path
    jax.block_until_ready(y4)
    assert jnp.allclose(y4, r3, atol=1e-1, rtol=1e-1)

    print("KERNEL_OK")
</pallas_src>

<mosaic_0001>
module attributes {stable_mosaic.version = 11 : i64} {
  func.func @_scale_conv1x1_kernel(%arg0: i32, %arg1: i32, %arg2: memref<1x240x128xf32, #tpu.memory_space<vmem>>, %arg3: memref<1x1x240xf32, #tpu.memory_space<vmem>>, %arg4: memref<40x240xf32, #tpu.memory_space<vmem>>, %arg5: memref<1x40x128xf32, #tpu.memory_space<vmem>>) attributes {dimension_semantics = [#tpu.dimension_semantics<parallel>, #tpu.dimension_semantics<parallel>], iteration_bounds = array<i64: 1, 2>, scalar_prefetch = 0 : i64, scratch_operands = 0 : i64, tpu.core_type = #tpu.core_type<tc>, window_params = [{transform_indices = @transform_0, window_bounds = array<i64: 1, 240, 128>}, {transform_indices = @transform_1, window_bounds = array<i64: 1, 1, 240>}, {pipeline_mode = #tpu.pipeline_mode<synchronous>, transform_indices = @transform_2, window_bounds = array<i64: 40, 240>}, {transform_indices = @transform_3, window_bounds = array<i64: 1, 40, 128>}]} {
    %c0 = arith.constant 0 : index
    %c0_0 = arith.constant 0 : index
    %0 = vector.load %arg4[%c0, %c0_0] : memref<40x240xf32, #tpu.memory_space<vmem>>, vector<40x240xf32>
    %1 = vector.shape_cast %0 : vector<40x240xf32> to vector<1x40x240xf32>
    %c0_1 = arith.constant 0 : index
    %c0_2 = arith.constant 0 : index
    %c0_3 = arith.constant 0 : index
    %2 = vector.load %arg3[%c0_1, %c0_2, %c0_3] : memref<1x1x240xf32, #tpu.memory_space<vmem>>, vector<1x1x240xf32>
    %3 = vector.broadcast %2 : vector<1x1x240xf32> to vector<1x40x240xf32>
    %4 = arith.mulf %1, %3 : vector<1x40x240xf32>
    %c0_4 = arith.constant 0 : index
    %c0_5 = arith.constant 0 : index
    %c0_6 = arith.constant 0 : index
    %5 = vector.load %arg2[%c0_4, %c0_5, %c0_6] : memref<1x240x128xf32, #tpu.memory_space<vmem>>, vector<1x240x128xf32>
    "tpu.trace_start"() <{level = 10 : i32, message = "bok,bkt->bot"}> : () -> ()
    %cst = arith.constant dense<0.000000e+00> : vector<1x40x128xf32>
    %6 = tpu.matmul %4, %5, %cst {dimension_numbers = #tpu.dot_dimension_numbers<[2], [1], [1], [2], [0, 0, 0, 1, 1, 2], [0], [0]>} : vector<1x40x240xf32>, vector<1x240x128xf32>, vector<1x40x128xf32> -> vector<1x40x128xf32>
    "tpu.trace_stop"() : () -> ()
    %c0_7 = arith.constant 0 : index
    %c0_8 = arith.constant 0 : index
    %c0_9 = arith.constant 0 : index
    %7 = vector.load %arg5[%c0_7, %c0_8, %c0_9] : memref<1x40x128xf32, #tpu.memory_space<vmem>>, vector<1x40x128xf32>
    tpu.vector_store %arg5[%c0_7, %c0_8, %c0_9], %6 {strides = array<i32>} : memref<1x40x128xf32, #tpu.memory_space<vmem>>, vector<1x40x128xf32>,
    return
  }
  func.func @transform_0(%arg0: i32, %arg1: i32) -> (i32, i32, i32) {
    %c0_i32 = arith.constant 0 : i32
    %c0_i32_0 = arith.constant 0 : i32
    return %arg0, %c0_i32, %arg1 : i32, i32, i32
  }
  func.func @transform_1(%arg0: i32, %arg1: i32) -> (i32, i32, i32) {
    %c0_i32 = arith.constant 0 : i32
    %c0_i32_0 = arith.constant 0 : i32
    %c0_i32_1 = arith.constant 0 : i32
    return %arg0, %c0_i32, %c0_i32_0 : i32, i32, i32
  }
  func.func @transform_2(%arg0: i32, %arg1: i32) -> (i32, i32) {
    %c0_i32 = arith.constant 0 : i32
    %c0_i32_0 = arith.constant 0 : i32
    %c0_i32_1 = arith.constant 0 : i32
    return %c0_i32, %c0_i32_0 : i32, i32
  }
  func.func @transform_3(%arg0: i32, %arg1: i32) -> (i32, i32, i32) {
    %c0_i32 = arith.constant 0 : i32
    %c0_i32_0 = arith.constant 0 : i32
    return %arg0, %c0_i32, %arg1 : i32, i32, i32
  }
}

</mosaic_0001>

<bundles_post_ra>
// kernel: tpu_custom_call.1
= control target key start
LH: loop header
LB: loop body
LE: loop exit
PB: predicated region body
PF: predicated region fallthrough
CT: control target
= control target key end

     0   :  { %s1200_s0 = inlined_call_operand.hbm [shape: f32[1,240,256], index: 0, kind: input, shape index: {}]   ;;  %s1201_s1 = inlined_call_operand.hbm [shape: f32[1,1,240], index: 1, kind: input, shape index: {}]   ;;  %s1202_s2 = inlined_call_operand.hbm [shape: f32[40,240], index: 2, kind: input, shape index: {}]   ;;  %s1203_s3 = inlined_call_operand.hbm [shape: f32[1,40,256], index: 3, kind: output, shape index: {}]  }
   0x1   :  { %1210 = sst [smem:[#allocation12_spill]] %s1201_s1 }
   0x2   :  { %8 = vsyncpa [#allocation3], 0 }
   0x3   :  { %10 = vsyncpa [#allocation3 + $0x1], 0 }
   0x4   :  { %11 = vsyncpa [#allocation6], 0 }
   0x5   :  { %12 = vsyncpa [#allocation4], 0 }
   0x6   :  { %14 = vsyncpa [#allocation4 + $0x1], 0  ;;  %s905_s12 = smov 0   ;;  %s907_s13 = smov 0  }
   0x7   :  { %s909_s14 = smov 0   ;;  %s911_s15 = smov 0  }
   0x8   :  { %s913_s16 = smov 0   ;;  %s915_s17 = smov 0  }
   0x9 LB: > { %s535_s18 = sadd.s32 4294967295, %s871_s17   ;;  %s536_s19 = sadd.s32 4294967294, %s871_s17   ;;  %s871_s17 = sphi %s915_s17, %s20_s17   ;;  %s867_s16 = sphi %s913_s16, %s1233_s16   ;;  %s863_s15 = sphi %s911_s15, %s1232_s15   ;;  %s859_s14 = sphi %s909_s14, %s1231_s14   ;;  %s855_s13 = sphi %s907_s13, %s1230_s13   ;;  %s851_s12 = sphi %s905_s12, %s1229_s12  }
   0xa   : > { %p48_p0 = scmp.ne.s32.totalorder %s859_s14, %s855_s13  ;;  %p49_p1 = scmp.eq.s32.totalorder %s871_s17, 0 }
   0xb   : > { %p54_p2 = scmp.ne.s32.totalorder %s855_s13, %s851_s12  ;;  %p943_p3 = scmp.eq.s32.totalorder %s535_s18, 0 }
   0xc   : > { %p127_p4 = scmp.eq.s32.totalorder %s535_s18, 1  ;;  %p947_p5 = por %p49_p1, %p48_p0 }
   0xd   : > { %s1211_s21 = scalar_select %p943_p3, 1, 0 }
   0xe   : > { %p133_p6 = scmp.eq.s32.totalorder %s536_s19, 1  ;;  %p953_p7 = por %p943_p3, %p54_p2 }
   0xf   : > { %p957_p8 = por %p127_p4, %p48_p0  ;;  %p537_p10 = scmp.ge.s32.totalorder %s871_s17, 1 }
  0x10   : > { %s1213_s23 = scalar_select %p953_p7, 1, 0 }
  0x11   : > { %s1214_s24 = scalar_select %p957_p8, 1, 0 }
  0x12   : > { %p961_p9 = por %p133_p6, %p54_p2  ;;  %p140_p11 = scmp.lt.s32.totalorder %s871_s17, 3 }
  0x13   : > { %s873_s27 = smov [#allocation5]   ;;  %p645_p1 = scmp.lt.s32.totalorder %s871_s17, 2 }
  0x14   : > { %s1215_s25 = scalar_select %p961_p9, 1, 0 }
  0x15   : > { %p968_p13 = pnand %p537_p10, %p140_p11  ;;  %s156_s28 = sshll.u32 %s873_s27, 4  ;;  %s157_s28 = int_to_ptr.vmem [resolvable:$true] %s156_s28 }
  0x16   : > { %p977_p4 = pnand %p645_p1, %p947_p5  ;;  %s874_s30 = smov [#allocation7]  }
  0x17   : > { %s1216_s26 = scalar_select %p968_p13, 1, 0 }
  0x18   : > { %p628_p0 = pneg %p968_p13  ;;  %s166_s4 = sshll.u32 %s874_s30, 4  ;;  %s167_s4 = int_to_ptr.vmem [resolvable:$true] %s166_s4 }
  0x19   : > { %s1217_s29 = scalar_select %p977_p4, 1, 0 }
  0x1a   : > { %p983_p2 = pnand %p628_p0, %p943_p3  ;;  %s718_s6 = scalar_lea.vmem %s157_s28, 32 }
  0x1b   : > { %p719_p10 = scmp.ne.s32.totalorder %s157_s28, %s718_s6  ;;  %p726_p1 = scmp.lt.s32.totalorder %s157_s28, %s157_s28 }
  0x1c   : > { %p709_p6 = pneg %p983_p2  ;;  %p727_p12 = scmp.lt.s32.totalorder %s718_s6, %s718_s6 }
  0x1e   : > { %p721_p5 = pnand %p719_p10, %p709_p6  ;;  %p728_p9 = por %p727_p12, %p726_p1 }
  0x20   : > { %p722_p11 = pneg %p721_p5 }
  0x22   : > { %p729_p8 = pnand %p728_p9, %p722_p11 }
  0x24   : > { %732 = shalt.err (!%p729_p8)
}
  0x25   : > { %s1219_s1 = sld [smem:[#allocation12_spill]]  ;;  %s744_s9 = scalar_lea.vmem %s167_s4, 1280 }
  0x26   : > { %p745_p0 = scmp.ne.s32.totalorder %s167_s4, %s744_s9  ;;  %p752_p10 = scmp.lt.s32.totalorder %s167_s4, %s167_s4 }
  0x27   : > { %p753_p5 = scmp.lt.s32.totalorder %s744_s9, %s744_s9 }
  0x28   : > { %p747_p3 = pnand %p745_p0, %p709_p6 }
  0x29   : > { %p754_p13 = por %p753_p5, %p752_p10 }
  0x2a   : > { %p748_p7 = pneg %p747_p3 }
  0x2b   : > { %631 = dma.hbm_to_vmem [thread:$0]  (!%p983_p2), %s1219_s1, 32, %s157_s28, [#allocation6]  }
  0x2c   : > { %p755_p4 = pnand %p754_p13, %p748_p7 }
  0x2e   : > { %758 = shalt.err (!%p755_p4)
}
  0x2f   : > { %s875_s10 = smov 256   ;;  %s876_s11 = smov 16  }
  0x30   : > { %634 = dma.hbm_to_vmem [thread:$0]  (!%p983_p2), %s1202_s2, 1280, %s167_s4, [#allocation6], %s875_s10, %s875_s10, %s876_s11  }
  0x31   : > { %s180_s22 = sand.u32 1, %s859_s14   ;;  %s29_s27 = sadd.s32 1, %s867_s16 }
  0x32   : > { %s613_s28 = smul.u32 240, %s180_s22  ;;  %p30_p3 = scmp.ge.s32.totalorder %s29_s27, 2 }
  0x33   : > { %s541_s30 = sshll.u32 %s867_s16, 7  ;;  %s181_s4 = scalar_lea.sflag [#allocation3], %s180_s22 }
  0x34   : > { %s191_s8 = scalar_lea.hbm %s1200_s0, %s541_s30  ;;  %s1235_s27 = smov (%p30_p3, %s29_s27), 0 }
  0x35   : > { %s184_s9 = scalar_lea.vmem [#allocation2], %s613_s28  ;;  %s37_s20 = ssub.s32 %s867_s16, %s1235_s27 }
  0x36   : > { %s192_s5 = sshll.u32 %s184_s9, 4  ;;  %p1017_p7 = scmp.eq.s32.totalorder %s37_s20, 0  ;;  %s193_s5 = int_to_ptr.vmem [resolvable:$true] %s192_s5 }
  0x37   : > { %p1221_p8 = scmp.ne.s32.totalorder %s1217_s29, 0  ;;  %s772_s11 = scalar_lea.vmem %s193_s5, 3840 }
  0x38   : > { %p773_p12 = scmp.ne.s32.totalorder %s193_s5, %s772_s11  ;;  %s877_s18 = smov [#allocation2]  }
  0x39   : > { %p761_p9 = pneg %p1221_p8  ;;  %s777_s19 = sshll.u32 %s877_s18, 4  ;;  %s778_s19 = int_to_ptr.vmem [resolvable:$false] %s777_s19 }
  0x3a   : > { %s779_s30 = scalar_lea.vmem %s778_s19, 7680  ;;  %p780_p2 = scmp.lt.s32.totalorder %s193_s5, %s778_s19 }
  0x3b   : > { %p775_p13 = pnand %p773_p12, %p761_p9  ;;  %p781_p6 = scmp.lt.s32.totalorder %s779_s30, %s772_s11 }
  0x3d   : > { %p776_p4 = pneg %p775_p13  ;;  %p782_p11 = por %p781_p6, %p780_p2 }
  0x3f   : > { %p783_p1 = pnand %p782_p11, %p776_p4 }
  0x41   : > { %786 = shalt.err (!%p783_p1)
}
  0x42   : > { %s878_s20 = smov 128   ;;  %s879_s22 = smov 8  }
  0x43   : > { %638 = dma.hbm_to_vmem [thread:$0]  (!%p1221_p8), %s191_s8, 3840, %s193_s5, %s181_s4, %s875_s10, %s878_s20, %s879_s22  }
  0x44   : > { %s1222_s28 = sadd.s32 1, %s859_s14  ;;  %p1223_p0 = scmp.ne.s32.totalorder %s1216_s26, 0 }
  0x45   : > { %s1031_s6 = scalar_select %p1017_p7, %s859_s14, %s1222_s28  }
  0x46   : > { %204 = sbr.rel (%p1223_p0) target bundleno = 357 (0x165), region = 32  ;;  %s1036_s7 = sand.u32 (!%p1223_p0), 1, %s855_s13  }
  0x47   : > { %s614_s9 = smul.u32 (!%p1223_p0), 240, %s1036_s7  ;;  %s207_s11 = scalar_lea.sflag (!%p1223_p0), [#allocation3], %s1036_s7 }
  0x48   : > { %p1224_p10 = scmp.ne.s32.totalorder (!%p1223_p0), %s1213_s23, 0 }
  0x49   : > { %s1040_s18 = scalar_lea.vmem (!%p1223_p0), [#allocation2], %s614_s9 }
  0x4b   : > { %838 = dma.done.wait (%p1224_p10), %s207_s11, 3840  }
  0x4c   : > { %840 = vsyncadd (%p1224_p10), %s207_s11, 4294963456  ;;  %p1225_p5 = scmp.ne.s32.totalorder %s1211_s21, 0 }
  0x4e   : > { %842 = dma.done.wait (%p1225_p5), [#allocation6], 1312  }
  0x4f   : > { %844 = vsyncadd (%p1225_p5), [#allocation6], 4294965984  ;;  %v880_v0 = vmov 0.0   ;;  %v288_v1 = vld [vmem:[%s1040_s18 + $0x78] sm:$0xff]  ;;  %v287_v2 = vld [vmem:[%s1040_s18 + $0x70] sm:$0xff]  ;;  %v253_v22 = vlaneseq  ;;  %vm303_vm0 = vcmask 916480  }
  0x50   : > { %319 = vmatprep.subr.mxu0 %v880_v0  ;;  %553 = vmatprep.subr.mxu1 %v880_v0  ;;  %v286_v3 = vld [vmem:[%s1040_s18 + $0x68] sm:$0xff]  ;;  %v285_v4 = vld [vmem:[%s1040_s18 + $0x60] sm:$0xff]  ;;  %v284_v5 = vld [vmem:[%s1040_s18 + $0x58] sm:$0xff]  ;;  %s615_s1 = smul.u32 40, %s1036_s7  ;;  %s550_s26 = sshll.u32 %s863_s15, 7 }
  0x51   : > { %320 = vmatpush1.msra.mxu0 %v288_v1  ;;  %583 = vmatpush1.msra.mxu1 %v288_v1  ;;  %v283_v6 = vld [vmem:[%s1040_s18 + $0x50] sm:$0xff]  ;;  %v282_v7 = vld [vmem:[%s1040_s18 + $0x48] sm:$0xff]  ;;  %v281_v8 = vld [vmem:[%s1040_s18 + $0x40] sm:$0xff]  ;;  %v254_v25 = vshrl.u32 %v253_v22, 7  ;;  %s1152_s8 = scalar_lea.hbm %s1203_s3, %s550_s26  ;;  %s415_s15 = scalar_lea.sflag [#allocation4], %s1036_s7 }
  0x52   : > { %321 = vmatprep.subr.mxu0 %v880_v0  ;;  %554 = vmatprep.subr.mxu1 %v880_v0  ;;  %v280_v9 = vld [vmem:[%s1040_s18 + $0x38] sm:$0xff]  ;;  %v279_v10 = vld [vmem:[%s1040_s18 + $0x30] sm:$0xff]  ;;  %v278_v11 = vld [vmem:[%s1040_s18 + $0x28] sm:$0xff]  ;;  %s240_s21 = scalar_lea.vmem [#allocation8], %s615_s1  ;;  %p1226_p7 = scmp.ne.s32.totalorder %s1214_s24, 0 }
  0x53   : > { %322 = vmatpush1.msra.mxu0 %v287_v2  ;;  %584 = vmatpush1.msra.mxu1 %v287_v2  ;;  %v277_v12 = vld [vmem:[%s1040_s18 + $0x20] sm:$0xff]  ;;  %v276_v13 = vld [vmem:[%s1040_s18 + $0x18] sm:$0xff]  ;;  %v275_v14 = vld [vmem:[%s1040_s18 + $0x10] sm:$0xff]  ;;  %v259_v28 = vsub.s32 1, %v254_v25  ;;  %v255_v31 = vsub.s32 0, %v254_v25  ;;  %s429_s23 = sshll.u32 %s240_s21, 4  ;;  %s1147_s23 = int_to_ptr.vmem [resolvable:$true] %s429_s23 }
  0x54   : > { %323 = vmatprep.subr.mxu0 %v880_v0  ;;  %555 = vmatprep.subr.mxu1 %v880_v0  ;;  %v274_v15 = vld [vmem:[%s1040_s18 + $0x8] sm:$0xff]  ;;  %v273_v16 = vld [vmem:[%s1040_s18] sm:$0xff]  ;;  %v300_v19 = vld [vmem:[%s1040_s18 + $0xd8] sm:$0xff]  ;;  %s787_s5 = scalar_lea.vmem %s1147_s23, 640  ;;  %s881_s4 = smov [#allocation8]  }
  0x55   : > { %324 = vmatpush1.msra.mxu0 %v286_v3  ;;  %585 = vmatpush1.msra.mxu1 %v286_v3  ;;  %v302_v17 = vld [vmem:[%s1040_s18 + $0xe8] sm:$0xff]  ;;  %v301_v18 = vld [vmem:[%s1040_s18 + $0xe0] sm:$0xff]  ;;  %v299_v20 = vld [vmem:[%s1040_s18 + $0xd0] sm:$0xff]  ;;  %p788_p3 = scmp.ne.s32.totalorder %s1147_s23, %s787_s5  ;;  %s791_s19 = sshll.u32 %s881_s4, 4  ;;  %s792_s19 = int_to_ptr.vmem [resolvable:$false] %s791_s19 }
  0x56   : > { %325 = vmatprep.subr.mxu0 %v880_v0  ;;  %556 = vmatprep.subr.mxu1 %v880_v0  ;;  %v298_v21 = vld [vmem:[%s1040_s18 + $0xc8] sm:$0xff]  ;;  %v297_v23 = vld [vmem:[%s1040_s18 + $0xc0] sm:$0xff]  ;;  %v296_v24 = vld [vmem:[%s1040_s18 + $0xb8] sm:$0xff]  ;;  %s793_s30 = scalar_lea.vmem %s792_s19, 1280  ;;  %p794_p12 = scmp.lt.s32.totalorder %s1147_s23, %s792_s19 }
  0x57   : > { %326 = vmatpush1.msra.mxu0 %v285_v4  ;;  %586 = vmatpush1.msra.mxu1 %v285_v4  ;;  %v295_v26 = vld [vmem:[%s1040_s18 + $0xb0] sm:$0xff]  ;;  %v294_v27 = vld [vmem:[%s1040_s18 + $0xa8] sm:$0xff]  ;;  %v293_v30 = vld [vmem:[%s1040_s18 + $0xa0] sm:$0xff]  ;;  %p789_p8 = pnand %p788_p3, %p1226_p7  ;;  %p795_p13 = scmp.lt.s32.totalorder %s793_s30, %s787_s5 }
  0x58   : > { %327 = vmatprep.subr.mxu0 %v880_v0  ;;  %557 = vmatprep.subr.mxu1 %v880_v0  ;;  %v251_v29 = vld [vmem:[#allocation5] sm:$0x3]  ;;  %v292_v32 = vld [vmem:[%s1040_s18 + $0x98] sm:$0xff]  ;;  %v290_v38 = vld [vmem:[%s1040_s18 + $0x88] sm:$0xff] }
  0x59   : > { %328 = vmatpush1.msra.mxu0 %v284_v5  ;;  %587 = vmatpush1.msra.mxu1 %v284_v5  ;;  %v260_v33 = vrot.slane %v251_v29, %v259_v28  ;;  %v242_v34 = vld [vmem:[#allocation7 + $0x8] sm:$0xff]  ;;  %v256_v36 = vrot.slane %v251_v29, %v255_v31  ;;  %v241_v37 = vld [vmem:[#allocation7] sm:$0xff]  ;;  %v248_v40 = vld [vmem:[#allocation7 + $0x38] sm:$0xff]  ;;  %p790_p9 = pneg %p789_p8  ;;  %p796_p4 = por %p795_p13, %p794_p12 }
  0x5a   : > { %329 = vmatprep.subr.mxu0 %v880_v0  ;;  %558 = vmatprep.subr.mxu1 %v880_v0  ;;  %v291_v35 = vld [vmem:[%s1040_s18 + $0x90] sm:$0xff]  ;;  %v289_v43 = vld [vmem:[%s1040_s18 + $0x80] sm:$0xff] }
  0x5b   : > { %330 = vmatpush1.msra.mxu0 %v283_v6  ;;  %588 = vmatpush1.msra.mxu1 %v283_v6  ;;  %v264_v39 = vmul.f32 %v260_v33, %v242_v34  ;;  %v244_v41 = vld [vmem:[#allocation7 + $0x18] sm:$0xff]  ;;  %v247_v42 = vld [vmem:[#allocation7 + $0x30] sm:$0xff]  ;;  %v263_v44 = vmul.f32 %v256_v36, %v241_v37  ;;  %v250_v45 = vld [vmem:[#allocation7 + $0x48] sm:$0xff]  ;;  %v270_v46 = vmul.f32 %v260_v33, %v248_v40  ;;  %p797_p2 = pnand %p796_p4, %p790_p9 }
  0x5c   : > { %331 = vmatprep.subr.mxu0 %v880_v0  ;;  %559 = vmatprep.subr.mxu1 %v880_v0  ;;  %v266_v47 = vmul.f32 %v260_v33, %v244_v41  ;;  %v243_v48 = vld [vmem:[#allocation7 + $0x10] sm:$0xff]  ;;  %v269_v49 = vmul.f32 %v256_v36, %v247_v42  ;;  %v246_v50 = vld [vmem:[#allocation7 + $0x28] sm:$0xff]  ;;  %v272_v51 = vmul.f32 %v260_v33, %v250_v45  ;;  %v249_v52 = vld [vmem:[#allocation7 + $0x40] sm:$0xff] }
  0x5d   : > { %332 = vmatpush1.msra.mxu0 %v282_v7  ;;  %589 = vmatpush1.msra.mxu1 %v282_v7  ;;  %v265_v53 = vmul.f32 %v256_v36, %v243_v48  ;;  %v268_v54 = vmul.f32 %v260_v33, %v246_v50  ;;  %v245_v55 = vld [vmem:[#allocation7 + $0x20] sm:$0xff]  ;;  %v271_v56 = vmul.f32 %v256_v36, %v249_v52 }
  0x5e   : > { %333 = vmatprep.subr.mxu0 %v880_v0  ;;  %560 = vmatprep.subr.mxu1 %v880_v0  ;;  %v267_v57 = vmul.f32 %v256_v36, %v245_v55 }
  0x5f   : > { %334 = vmatpush1.msra.mxu0 %v281_v8  ;;  %590 = vmatpush1.msra.mxu1 %v281_v8 }
  0x60   : > { %335 = vmatprep.subr.mxu0 %v880_v0  ;;  %561 = vmatprep.subr.mxu1 %v880_v0 }
  0x61   : > { %336 = vmatpush1.msra.mxu0 %v280_v9  ;;  %591 = vmatpush1.msra.mxu1 %v280_v9 }
  0x62   : > { %337 = vmatprep.subr.mxu0 %v880_v0  ;;  %562 = vmatprep.subr.mxu1 %v880_v0 }
  0x63   : > { %338 = vmatpush1.msra.mxu0 %v279_v10  ;;  %592 = vmatpush1.msra.mxu1 %v279_v10 }
  0x64   : > { %339 = vmatprep.subr.mxu0 %v880_v0  ;;  %563 = vmatprep.subr.mxu1 %v880_v0 }
  0x65   : > { %340 = vmatpush1.msra.mxu0 %v278_v11  ;;  %593 = vmatpush1.msra.mxu1 %v278_v11 }
  0x66   : > { %341 = vmatprep.subr.mxu0 %v880_v0  ;;  %564 = vmatprep.subr.mxu1 %v880_v0 }
  0x67   : > { %342 = vmatpush1.msra.mxu0 %v277_v12  ;;  %594 = vmatpush1.msra.mxu1 %v277_v12 }
  0x68   : > { %343 = vmatprep.subr.mxu0 %v880_v0  ;;  %565 = vmatprep.subr.mxu1 %v880_v0 }
  0x69   : > { %344 = vmatpush1.msra.mxu0 %v276_v13  ;;  %595 = vmatpush1.msra.mxu1 %v276_v13 }
  0x6a   : > { %345 = vmatprep.subr.mxu0 %v880_v0  ;;  %566 = vmatprep.subr.mxu1 %v880_v0 }
  0x6b   : > { %346 = vmatpush1.msra.mxu0 %v275_v14  ;;  %596 = vmatpush1.msra.mxu1 %v275_v14 }
  0x6c   : > { %347 = vmatprep.subr.mxu0 %v880_v0  ;;  %567 = vmatprep.subr.mxu1 %v880_v0 }
  0x6d   : > { %348 = vmatpush1.msra.mxu0 %v274_v15  ;;  %597 = vmatpush1.msra.mxu1 %v274_v15 }
  0x6e   : > { %349 = vmatprep.subr.mxu0 %v880_v0  ;;  %568 = vmatprep.subr.mxu1 %v880_v0 }
  0x6f   : > { %350 = vmatpush1.msra.mxu0 %v273_v16  ;;  %598 = vmatpush1.msra.mxu1 %v273_v16 }
  0x70   : > { %355 = vmatprep.subr.mxu0 %v880_v0  ;;  %569 = vmatprep.subr.mxu1 %v880_v0 }
  0x71   : > { %356 = vmatpush2.msra.mxu0 %v302_v17  ;;  %599 = vmatpush2.msra.mxu1 %v302_v17 }
  0x72   : > { %357 = vmatprep.subr.mxu0 %v880_v0  ;;  %570 = vmatprep.subr.mxu1 %v880_v0 }
  0x73   : > { %358 = vmatpush2.msra.mxu0 %v301_v18  ;;  %600 = vmatpush2.msra.mxu1 %v301_v18 }
  0x74   : > { %359 = vmatprep.subr.mxu0 %v880_v0  ;;  %571 = vmatprep.subr.mxu1 %v880_v0 }
  0x75   : > { %360 = vmatpush2.msra.mxu0 %v300_v19  ;;  %601 = vmatpush2.msra.mxu1 %v300_v19 }
  0x76   : > { %361 = vmatprep.subr.mxu0 %v880_v0  ;;  %572 = vmatprep.subr.mxu1 %v880_v0 }
  0x77   : > { %362 = vmatpush2.msra.mxu0 %v299_v20  ;;  %602 = vmatpush2.msra.mxu1 %v299_v20 }
  0x78   : > { %363 = vmatprep.subr.mxu0 %v880_v0  ;;  %573 = vmatprep.subr.mxu1 %v880_v0 }
  0x79   : > { %364 = vmatpush2.msra.mxu0 %v298_v21  ;;  %603 = vmatpush2.msra.mxu1 %v298_v21 }
  0x7a   : > { %365 = vmatprep.subr.mxu0 %v880_v0  ;;  %574 = vmatprep.subr.mxu1 %v880_v0 }
  0x7b   : > { %366 = vmatpush2.msra.mxu0 %v297_v23  ;;  %604 = vmatpush2.msra.mxu1 %v297_v23 }
  0x7c   : > { %367 = vmatprep.subr.mxu0 %v880_v0  ;;  %575 = vmatprep.subr.mxu1 %v880_v0 }
  0x7d   : > { %368 = vmatpush2.msra.mxu0 %v296_v24  ;;  %605 = vmatpush2.msra.mxu1 %v296_v24 }
  0x7e   : > { %369 = vmatprep.subr.mxu0 %v880_v0  ;;  %576 = vmatprep.subr.mxu1 %v880_v0 }
  0x7f   : > { %370 = vmatpush2.msra.mxu0 %v295_v26  ;;  %606 = vmatpush2.msra.mxu1 %v295_v26 }
  0x80   : > { %371 = vmatprep.subr.mxu0 %v880_v0  ;;  %577 = vmatprep.subr.mxu1 %v880_v0 }
  0x81   : > { %372 = vmatpush2.msra.mxu0 %v294_v27  ;;  %607 = vmatpush2.msra.mxu1 %v294_v27 }
  0x82   : > { %373 = vmatprep.subr.mxu0 %v880_v0  ;;  %578 = vmatprep.subr.mxu1 %v880_v0 }
  0x83   : > { %374 = vmatpush2.msra.mxu0 %v293_v30  ;;  %608 = vmatpush2.msra.mxu1 %v293_v30 }
  0x84   : > { %375 = vmatprep.subr.mxu0 %v880_v0  ;;  %579 = vmatprep.subr.mxu1 %v880_v0 }
  0x85   : > { %376 = vmatpush2.msra.mxu0 %v292_v32  ;;  %609 = vmatpush2.msra.mxu1 %v292_v32 }
  0x86   : > { %377 = vmatprep.subr.mxu0 %v880_v0  ;;  %580 = vmatprep.subr.mxu1 %v880_v0 }
  0x87   : > { %378 = vmatpush2.msra.mxu0 %v291_v35  ;;  %610 = vmatpush2.msra.mxu1 %v291_v35 }
  0x88   : > { %379 = vmatprep.subr.mxu0 %v880_v0  ;;  %581 = vmatprep.subr.mxu1 %v880_v0 }
  0x89   : > { %380 = vmatpush2.msra.mxu0 %v290_v38  ;;  %611 = vmatpush2.msra.mxu1 %v290_v38 }
  0x8a   : > { %381 = vmatprep.subr.mxu0 %v880_v0  ;;  %545 = vmatprep.mubr.msk.f32.mxu0 %vm303_vm0, %v264_v39 }
  0x8b   : > { %382 = vmatpush2.msra.mxu0 %v289_v43  ;;  %582 = vmatprep.subr.mxu1 %v880_v0 }
  0x8c   : > { %384 = vmatmul.mubr.f32.vlgmr.msra.gmra.mxu0 %v263_v44  ;;  %612 = vmatpush2.msra.mxu1 %v289_v43 }
  0x8d   : > { %548 = vmatprep.mubr.msk.f32.mxu1 %vm303_vm0, %v270_v46  ;;  %546 = vmatprep.mubr.msk.f32.mxu0 %vm303_vm0, %v266_v47 }
  0x8e   : > { %399 = vmatmul.mubr.f32.vlgmr.msra.gmra.mxu1 %v269_v49 }
  0x8f   : > { %549 = vmatprep.mubr.msk.f32.mxu1 %vm303_vm0, %v272_v51 }
  0x90   : > { %389 = vmatmul.mubr.f32.gmra.mxu0 %v265_v53 }
  0x91   : > { %547 = vmatprep.mubr.msk.f32.mxu0 %vm303_vm0, %v268_v54 }
  0x92   : > { %404 = vmatmul.mubr.f32.gmra.mxu1 %v271_v56 }
  0x94   : > { %394 = vmatmul.mubr.f32.gmra.mxu0 %v267_v57 }
 0x14c   : > { %v385_v58 = vpop.f32.mrf.mxu0 }
 0x14d   : > { %409 = vst [vmem:[%s240_s21] sm:$0xff] %v385_v58 }
 0x14e   : > { %v387_v59 = vpop.f32.mrf.mxu0  ;;  %v400_v60 = vpop.f32.mrf.mxu1 }
 0x14f   : > { %412 = vst [vmem:[%s240_s21 + $0x18] sm:$0xff] %v400_v60 }
 0x150   : > { %v390_v61 = vpop.f32.mrf.mxu0  ;;  %v402_v62 = vpop.f32.mrf.mxu1 }
 0x151   : > { %410 = vst [vmem:[%s240_s21 + $0x8] sm:$0xff] %v390_v61 }
 0x152   : > { %v392_v63 = vpop.f32.mrf.mxu0  ;;  %v405_v0 = vpop.f32.mrf.mxu1 }
 0x153   : > { %413 = vst [vmem:[%s240_s21 + $0x20] sm:$0xff] %v405_v0 }
 0x154   : > { %v395_v1 = vpop.f32.mrf.mxu0  ;;  %v407_v2 = vpop.f32.mrf.mxu1 }
 0x155   : > { %411 = vst [vmem:[%s240_s21 + $0x10] sm:$0xff] %v395_v1 }
 0x156   : > { %v397_v3 = vpop.f32.mrf.mxu0 }
 0x157   : > { %800 = shalt.err (!%p797_p2)
}
 0x158   : > { %s801_s20 = scalar_lea.hbm %s1152_s8, 640  ;;  %s805_s9 = scalar_lea.hbm %s1203_s3, 1280 }
 0x159   : > { %p802_p6 = scmp.ne.s32.totalorder %s1152_s8, %s801_s20  ;;  %p806_p0 = scmp.lt.s32.totalorder %s1152_s8, %s1203_s3 }
 0x15a   : > { %p807_p10 = scmp.lt.s32.totalorder %s805_s9, %s801_s20 }
 0x15b   : > { %p803_p11 = pnand %p802_p6, %p1226_p7 }
 0x15c   : > { %p808_p5 = por %p807_p10, %p806_p0 }
 0x15d   : > { %p804_p1 = pneg %p803_p11 }
 0x15f   : > { %p809_p3 = pnand %p808_p5, %p804_p1 }
 0x161   : > { %812 = shalt.err (!%p809_p3)
}
 0x162   : > { %s882_s1 = smov 128   ;;  %s883_s21 = smov 256  }
 0x163   : > { %s884_s26 = smov 8  }
 0x164   : > { %626 = dma.vmem_to_hbm [thread:$0]  (%p1226_p7), %s1147_s23, 640, %s1152_s8, %s415_s15, %s882_s1, %s883_s21, %s884_s26  }
 0x165 PF: > { %s444_s29 = sand.u32 1, %s851_s12   ;;  %p1227_p8 = scmp.ne.s32.totalorder %s1215_s25, 0 }
 0x166   : > { %p1228_p9 = scmp.ge.s32.totalorder %s871_s17, 2  ;;  %s445_s10 = scalar_lea.sflag [#allocation4], %s444_s29 }
 0x168   : > { %p640_p12 = pnand %p1228_p9, %p1227_p8 }
 0x16a   : > { %p641_p13 = pneg %p640_p12 }
 0x16c   : > { %846 = dma.done.wait (%p641_p13), %s445_s10, 640  }
 0x16d   : > { %848 = vsyncadd (%p641_p13), %s445_s10, 4294966656  ;;  %s20_s17 = sadd.s32 1, %s871_s17   ;;  %s1229_s12 = smov %s855_s13 }
 0x16e   : > { %p17_p4 = scmp.ge.s32.totalorder %s20_s17, 4   ;;  %s1230_s13 = smov %s859_s14 }
 0x16f   : > { %s1231_s14 = smov %s1031_s6  ;;  %s1232_s15 = smov %s867_s16 }
 0x170   : > { %s1233_s16 = smov %s1235_s27  ;;  %19 = sbr.rel (!%p17_p4) target bundleno = 9 (0x9), region = 86 }
 0x175   :  { %450 = vsyncpa [#allocation3], 1 }
 0x176   :  { %452 = vsyncpa [#allocation3 + $0x1], 1 }
 0x177   :  { %453 = vsyncpa [#allocation6], 1 }
 0x178   :  { %454 = vsyncpa [#allocation4], 1 }
 0x179   :  { %456 = vsyncpa [#allocation4 + $0x1], 1 }

</bundles_post_ra>
